<compile_context>
chip_gen: v7x
topology: tpu7x:2x2x1
jax: 0.10.0
libtpu: 0.0.40
codegen_flags: <defaults>
</compile_context>

<pallas_src>
import functools

import jax
import jax.numpy as jnp
from jax.experimental import pallas as pl
from jax.experimental.pallas import tpu as pltpu

LANE = 128


def _round_up(n, m):
    return ((n + m - 1) // m) * m


def _vae_encoder_kernel(
    x_ref, w1_ref, b1_ref, w2_ref, b2_ref, wh_ref, bh_ref,
    m1_ref, m2_ref, eps_ref,
    out_ref,
    *, latent, out_lanes,
):
    x = x_ref[...]  # bf16 (cast on host)

    # fc1 -> sigmoid -> dropout  (bf16 MXU operands, f32 accumulate/activation)
    h1 = jax.nn.sigmoid(
        jnp.dot(x, w1_ref[...], preferred_element_type=jnp.float32) + b1_ref[...])
    h1 = (h1 * m1_ref[...].astype(jnp.float32)).astype(jnp.bfloat16)

    # fc2 -> sigmoid -> dropout
    h2 = jax.nn.sigmoid(
        jnp.dot(h1, w2_ref[...], preferred_element_type=jnp.float32) + b2_ref[...])
    h2 = (h2 * m2_ref[...].astype(jnp.float32)).astype(jnp.bfloat16)

    # Fused mean|logvar head: one MXU pass over the concatenated weights.
    heads = jnp.dot(h2, wh_ref[...], preferred_element_type=jnp.float32) + bh_ref[...]
    mean = heads[:, :latent]
    logvar = heads[:, latent:2 * latent]

    # Reparameterize: z = mean + eps * exp(0.5 * logvar)
    z = mean + eps_ref[...] * jnp.exp(0.5 * logvar)

    # Single lane-dense 128-lane slab [mean | logvar | z | 0], one full store.
    pad = jnp.zeros((mean.shape[0], out_lanes - 3 * latent), jnp.float32)
    out_ref[...] = jnp.concatenate([mean, logvar, z, pad], axis=1)


def variational_encoder_forward(x, params, eps, m1, m2, *, tile_b=128):
    """x: (B, inputSize) f32. eps: (B, latent). m1/m2: inverted-dropout masks.

    Returns (mean, logvar, z), each (B, latent) f32.
    """
    B, input_size = x.shape
    hidden = params["w1"].shape[1]
    latent = params["wm"].shape[1]
    out_lanes = max(LANE, _round_up(3 * latent, LANE))

    tile_b = min(tile_b, _round_up(B, 8))
    b_pad = _round_up(B, tile_b)
    n_tiles = b_pad // tile_b

    def pad_rows(a):
        return a if a.shape[0] == b_pad else jnp.pad(a, ((0, b_pad - a.shape[0]), (0, 0)))

    # bf16 MXU operands; biases / eps stay f32.
    x_b = pad_rows(x).astype(jnp.bfloat16)
    m1_b = pad_rows(m1).astype(jnp.bfloat16)       # values {0, 1/keep} exact in bf16
    m2_b = pad_rows(m2).astype(jnp.bfloat16)
    eps_p = pad_rows(eps).astype(jnp.float32)

    w1 = params["w1"].astype(jnp.bfloat16)
    w2 = params["w2"].astype(jnp.bfloat16)
    wh = jnp.concatenate([params["wm"], params["wl"]], axis=1).astype(jnp.bfloat16)
    b1 = params["b1"].astype(jnp.float32)
    b2 = params["b2"].astype(jnp.float32)
    bh = jnp.concatenate([params["bm"], params["bl"]], axis=1).astype(jnp.float32)

    kernel = functools.partial(_vae_encoder_kernel, latent=latent, out_lanes=out_lanes)

    def nbytes(*arrs):
        return int(sum(a.size * a.dtype.itemsize for a in arrs))

    cost = pl.CostEstimate(
        flops=2 * b_pad * (input_size * hidden + hidden * input_size
                           + input_size * 2 * latent),
        transcendentals=b_pad * (hidden + input_size + latent),
        bytes_accessed=nbytes(x_b, w1, b1, w2, b2, wh, bh, m1_b, m2_b, eps_p)
        + b_pad * out_lanes * 4,
    )

    out = pl.pallas_call(
        kernel,
        grid=(n_tiles,),
        in_specs=[
            pl.BlockSpec((tile_b, input_size), lambda i: (i, 0)),      # x tile
            pl.BlockSpec((input_size, hidden), lambda i: (0, 0)),      # w1 (resident)
            pl.BlockSpec((1, hidden), lambda i: (0, 0)),               # b1
            pl.BlockSpec((hidden, input_size), lambda i: (0, 0)),      # w2
            pl.BlockSpec((1, input_size), lambda i: (0, 0)),           # b2
            pl.BlockSpec((input_size, 2 * latent), lambda i: (0, 0)),  # fused head W
            pl.BlockSpec((1, 2 * latent), lambda i: (0, 0)),           # fused head b
            pl.BlockSpec((tile_b, hidden), lambda i: (i, 0)),          # dropout mask 1
            pl.BlockSpec((tile_b, input_size), lambda i: (i, 0)),      # dropout mask 2
            pl.BlockSpec((tile_b, latent), lambda i: (i, 0)),          # eps
        ],
        out_specs=pl.BlockSpec((tile_b, out_lanes), lambda i: (i, 0)), # [mean|logvar|z]
        out_shape=jax.ShapeDtypeStruct((b_pad, out_lanes), jnp.float32),
        compiler_params=pltpu.CompilerParams(
            dimension_semantics=("parallel",),
            vmem_limit_bytes=32 * 1024 * 1024,
        ),
        cost_estimate=cost,
    )(x_b, w1, b1, w2, b2, wh, bh, m1_b, m2_b, eps_p)

    mean = out[:B, :latent]
    logvar = out[:B, latent:2 * latent]
    z = out[:B, 2 * latent:3 * latent]
    return mean, logvar, z


def init_params(key, input_size, latent_dim):
    """Deterministic parameter init (shapes mirror the PyTorch module)."""
    hidden = 4 * input_size
    ks = jax.random.split(key, 8)

    def lin(kw, kb, fan_in, fan_out):
        bound = 1.0 / jnp.sqrt(fan_in)
        w = jax.random.uniform(kw, (fan_in, fan_out), jnp.float32, -bound, bound)
        b = jax.random.uniform(kb, (1, fan_out), jnp.float32, -bound, bound)
        return w, b

    w1, b1 = lin(ks[0], ks[1], input_size, hidden)
    w2, b2 = lin(ks[2], ks[3], hidden, input_size)
    wm, bm = lin(ks[4], ks[5], input_size, latent_dim)
    wl, bl = lin(ks[6], ks[7], input_size, latent_dim)
    return dict(w1=w1, b1=b1, w2=w2, b2=b2, wm=wm, bm=bm, wl=wl, bl=bl)


if __name__ == "__main__":
    # Small shapes consistent with the module: x is (batch, inputSize).
    batch = 256
    input_size = 32
    latent_dim = 8
    hidden = 4 * input_size
    p_drop = 0.5            # nn.Dropout() default
    keep_prob = 1.0 - p_drop

    root = jax.random.PRNGKey(0)
    k_param, k_x, k_eps, k_m1, k_m2 = jax.random.split(root, 5)

    params = init_params(k_param, input_size, latent_dim)
    x = jax.random.normal(k_x, (batch, input_size), jnp.float32)
    # Reparameterization noise eps ~ N(0,1) and inverted-dropout masks
    # (host-generated; torch's RNG stream is not reproducible anyway).
    eps = jax.random.normal(k_eps, (batch, latent_dim), jnp.float32)
    m1 = jax.random.bernoulli(k_m1, keep_prob, (batch, hidden)).astype(jnp.float32) / keep_prob
    m2 = jax.random.bernoulli(k_m2, keep_prob, (batch, input_size)).astype(jnp.float32) / keep_prob

    mean, logvar, z = variational_encoder_forward(x, params, eps, m1, m2, tile_b=128)
    jax.block_until_ready((mean, logvar, z))

    # --- Reference in plain JAX: same bf16 matmul operands, f32 accumulation,
    # --- same dropout masks. ---
    w1b = params["w1"].astype(jnp.bfloat16)
    w2b = params["w2"].astype(jnp.bfloat16)
    wmb = params["wm"].astype(jnp.bfloat16)
    wlb = params["wl"].astype(jnp.bfloat16)

    pre1 = jnp.dot(x.astype(jnp.bfloat16), w1b,
                   preferred_element_type=jnp.float32) + params["b1"]
    h1 = (jax.nn.sigmoid(pre1) * m1).astype(jnp.bfloat16)
    pre2 = jnp.dot(h1, w2b, preferred_element_type=jnp.float32) + params["b2"]
    h2 = (jax.nn.sigmoid(pre2) * m2).astype(jnp.bfloat16)
    mean_ref = jnp.dot(h2, wmb, preferred_element_type=jnp.float32) + params["bm"]
    logvar_ref = jnp.dot(h2, wlb, preferred_element_type=jnp.float32) + params["bl"]
    z_ref = mean_ref + eps * jnp.exp(0.5 * logvar_ref)

    assert mean.shape == (batch, latent_dim)
    assert logvar.shape == (batch, latent_dim)
    assert z.shape == (batch, latent_dim)
    assert jnp.allclose(mean, mean_ref, atol=1e-2, rtol=1e-2)
    assert jnp.allclose(logvar, logvar_ref, atol=1e-2, rtol=1e-2)
    assert jnp.allclose(z, z_ref, atol=1e-2, rtol=1e-2)

    print("KERNEL_OK")
</pallas_src>

<mosaic_0001>
module attributes {stable_mosaic.version = 11 : i64} {
  func.func @_vae_encoder_kernel(%arg0: i32, %arg1: memref<128x32xbf16, #tpu.memory_space<vmem>>, %arg2: memref<32x128xbf16, #tpu.memory_space<vmem>>, %arg3: memref<1x128xf32, #tpu.memory_space<vmem>>, %arg4: memref<128x32xbf16, #tpu.memory_space<vmem>>, %arg5: memref<1x32xf32, #tpu.memory_space<vmem>>, %arg6: memref<32x16xbf16, #tpu.memory_space<vmem>>, %arg7: memref<1x16xf32, #tpu.memory_space<vmem>>, %arg8: memref<128x128xbf16, #tpu.memory_space<vmem>>, %arg9: memref<128x32xbf16, #tpu.memory_space<vmem>>, %arg10: memref<128x8xf32, #tpu.memory_space<vmem>>, %arg11: memref<128x128xf32, #tpu.memory_space<vmem>>) attributes {dimension_semantics = [#tpu.dimension_semantics<parallel>], iteration_bounds = array<i64: 2>, scalar_prefetch = 0 : i64, scratch_operands = 0 : i64, tpu.core_type = #tpu.core_type<tc>, window_params = [{transform_indices = @transform_0, window_bounds = array<i64: 128, 32>}, {pipeline_mode = #tpu.pipeline_mode<synchronous>, transform_indices = @transform_1, window_bounds = array<i64: 32, 128>}, {pipeline_mode = #tpu.pipeline_mode<synchronous>, transform_indices = @transform_2, window_bounds = array<i64: 1, 128>}, {pipeline_mode = #tpu.pipeline_mode<synchronous>, transform_indices = @transform_3, window_bounds = array<i64: 128, 32>}, {pipeline_mode = #tpu.pipeline_mode<synchronous>, transform_indices = @transform_4, window_bounds = array<i64: 1, 32>}, {pipeline_mode = #tpu.pipeline_mode<synchronous>, transform_indices = @transform_5, window_bounds = array<i64: 32, 16>}, {pipeline_mode = #tpu.pipeline_mode<synchronous>, transform_indices = @transform_6, window_bounds = array<i64: 1, 16>}, {transform_indices = @transform_7, window_bounds = array<i64: 128, 128>}, {transform_indices = @transform_8, window_bounds = array<i64: 128, 32>}, {transform_indices = @transform_9, window_bounds = array<i64: 128, 8>}, {transform_indices = @transform_10, window_bounds = array<i64: 128, 128>}]} {
    %c0 = arith.constant 0 : index
    %c0_0 = arith.constant 0 : index
    %0 = vector.load %arg1[%c0, %c0_0] : memref<128x32xbf16, #tpu.memory_space<vmem>>, vector<128x32xbf16>
    %c0_1 = arith.constant 0 : index
    %c0_2 = arith.constant 0 : index
    %1 = vector.load %arg2[%c0_1, %c0_2] : memref<32x128xbf16, #tpu.memory_space<vmem>>, vector<32x128xbf16>
    %cst = arith.constant dense<0.000000e+00> : vector<128x128xf32>
    %2 = tpu.matmul %0, %1, %cst {dimension_numbers = #tpu.dot_dimension_numbers<[1], [0], [0], [1], [0, 0, 1, 1], [], []>} : vector<128x32xbf16>, vector<32x128xbf16>, vector<128x128xf32> -> vector<128x128xf32>
    %c0_3 = arith.constant 0 : index
    %c0_4 = arith.constant 0 : index
    %3 = vector.load %arg3[%c0_3, %c0_4] : memref<1x128xf32, #tpu.memory_space<vmem>>, vector<1x128xf32>
    %4 = vector.broadcast %3 : vector<1x128xf32> to vector<128x128xf32>
    %5 = arith.addf %2, %4 : vector<128x128xf32>
    %6 = arith.negf %5 : vector<128x128xf32>
    %7 = math.exp %6 : vector<128x128xf32>
    %cst_5 = arith.constant 1.000000e+00 : f32
    %8 = vector.broadcast %cst_5 : f32 to vector<128x128xf32>
    %9 = arith.addf %8, %7 : vector<128x128xf32>
    %10 = arith.divf %8, %9 : vector<128x128xf32>
    %c0_6 = arith.constant 0 : index
    %c0_7 = arith.constant 0 : index
    %11 = vector.load %arg8[%c0_6, %c0_7] : memref<128x128xbf16, #tpu.memory_space<vmem>>, vector<128x128xbf16>
    %12 = arith.extf %11 : vector<128x128xbf16> to vector<128x128xf32>
    %13 = arith.mulf %10, %12 : vector<128x128xf32>
    %14 = arith.truncf %13 : vector<128x128xf32> to vector<128x128xbf16>
    %c0_8 = arith.constant 0 : index
    %c0_9 = arith.constant 0 : index
    %15 = vector.load %arg4[%c0_8, %c0_9] : memref<128x32xbf16, #tpu.memory_space<vmem>>, vector<128x32xbf16>
    %cst_10 = arith.constant dense<0.000000e+00> : vector<128x32xf32>
    %16 = tpu.matmul %14, %15, %cst_10 {dimension_numbers = #tpu.dot_dimension_numbers<[1], [0], [0], [1], [0, 0, 1, 1], [], []>} : vector<128x128xbf16>, vector<128x32xbf16>, vector<128x32xf32> -> vector<128x32xf32>
    %c0_11 = arith.constant 0 : index
    %c0_12 = arith.constant 0 : index
    %17 = vector.load %arg5[%c0_11, %c0_12] : memref<1x32xf32, #tpu.memory_space<vmem>>, vector<1x32xf32>
    %18 = vector.broadcast %17 : vector<1x32xf32> to vector<128x32xf32>
    %19 = arith.addf %16, %18 : vector<128x32xf32>
    %20 = arith.negf %19 : vector<128x32xf32>
    %21 = math.exp %20 : vector<128x32xf32>
    %cst_13 = arith.constant 1.000000e+00 : f32
    %22 = vector.broadcast %cst_13 : f32 to vector<128x32xf32>
    %23 = arith.addf %22, %21 : vector<128x32xf32>
    %24 = arith.divf %22, %23 : vector<128x32xf32>
    %c0_14 = arith.constant 0 : index
    %c0_15 = arith.constant 0 : index
    %25 = vector.load %arg9[%c0_14, %c0_15] : memref<128x32xbf16, #tpu.memory_space<vmem>>, vector<128x32xbf16>
    %26 = arith.extf %25 : vector<128x32xbf16> to vector<128x32xf32>
    %27 = arith.mulf %24, %26 : vector<128x32xf32>
    %28 = arith.truncf %27 : vector<128x32xf32> to vector<128x32xbf16>
    %c0_16 = arith.constant 0 : index
    %c0_17 = arith.constant 0 : index
    %29 = vector.load %arg6[%c0_16, %c0_17] : memref<32x16xbf16, #tpu.memory_space<vmem>>, vector<32x16xbf16>
    %cst_18 = arith.constant dense<0.000000e+00> : vector<128x16xf32>
    %30 = tpu.matmul %28, %29, %cst_18 {dimension_numbers = #tpu.dot_dimension_numbers<[1], [0], [0], [1], [0, 0, 1, 1], [], []>} : vector<128x32xbf16>, vector<32x16xbf16>, vector<128x16xf32> -> vector<128x16xf32>
    %c0_19 = arith.constant 0 : index
    %c0_20 = arith.constant 0 : index
    %31 = vector.load %arg7[%c0_19, %c0_20] : memref<1x16xf32, #tpu.memory_space<vmem>>, vector<1x16xf32>
    %32 = vector.broadcast %31 : vector<1x16xf32> to vector<128x16xf32>
    %33 = arith.addf %30, %32 : vector<128x16xf32>
    %34 = vector.extract_strided_slice %33 {offsets = [0, 0], sizes = [128, 8], strides = [1, 1]} : vector<128x16xf32> to vector<128x8xf32>
    %35 = vector.extract_strided_slice %33 {offsets = [0, 8], sizes = [128, 8], strides = [1, 1]} : vector<128x16xf32> to vector<128x8xf32>
    %c0_21 = arith.constant 0 : index
    %c0_22 = arith.constant 0 : index
    %36 = vector.load %arg10[%c0_21, %c0_22] : memref<128x8xf32, #tpu.memory_space<vmem>>, vector<128x8xf32>
    %cst_23 = arith.constant 5.000000e-01 : f32
    %37 = vector.broadcast %cst_23 : f32 to vector<128x8xf32>
    %38 = arith.mulf %37, %35 : vector<128x8xf32>
    %39 = math.exp %38 : vector<128x8xf32>
    %40 = arith.mulf %36, %39 : vector<128x8xf32>
    %41 = arith.addf %34, %40 : vector<128x8xf32>
    %cst_24 = arith.constant 0.000000e+00 : f32
    %42 = vector.broadcast %cst_24 : f32 to vector<128x104xf32>
    %43 = tpu.concatenate %34, %35, %41, %42 in 1 : vector<128x8xf32>, vector<128x8xf32>, vector<128x8xf32>, vector<128x104xf32> -> vector<128x128xf32>
    %c0_25 = arith.constant 0 : index
    %c0_26 = arith.constant 0 : index
    %44 = vector.load %arg11[%c0_25, %c0_26] : memref<128x128xf32, #tpu.memory_space<vmem>>, vector<128x128xf32>
    tpu.vector_store %arg11[%c0_25, %c0_26], %43 {strides = array<i32>} : memref<128x128xf32, #tpu.memory_space<vmem>>, vector<128x128xf32>,
    return
  }
  func.func @transform_0(%arg0: i32) -> (i32, i32) {
    %c0_i32 = arith.constant 0 : i32
    %c0_i32_0 = arith.constant 0 : i32
    return %arg0, %c0_i32 : i32, i32
  }
  func.func @transform_1(%arg0: i32) -> (i32, i32) {
    %c0_i32 = arith.constant 0 : i32
    %c0_i32_0 = arith.constant 0 : i32
    %c0_i32_1 = arith.constant 0 : i32
    return %c0_i32, %c0_i32_0 : i32, i32
  }
  func.func @transform_2(%arg0: i32) -> (i32, i32) {
    %c0_i32 = arith.constant 0 : i32
    %c0_i32_0 = arith.constant 0 : i32
    %c0_i32_1 = arith.constant 0 : i32
    return %c0_i32, %c0_i32_0 : i32, i32
  }
  func.func @transform_3(%arg0: i32) -> (i32, i32) {
    %c0_i32 = arith.constant 0 : i32
    %c0_i32_0 = arith.constant 0 : i32
    %c0_i32_1 = arith.constant 0 : i32
    return %c0_i32, %c0_i32_0 : i32, i32
  }
  func.func @transform_4(%arg0: i32) -> (i32, i32) {
    %c0_i32 = arith.constant 0 : i32
    %c0_i32_0 = arith.constant 0 : i32
    %c0_i32_1 = arith.constant 0 : i32
    return %c0_i32, %c0_i32_0 : i32, i32
  }
  func.func @transform_5(%arg0: i32) -> (i32, i32) {
    %c0_i32 = arith.constant 0 : i32
    %c0_i32_0 = arith.constant 0 : i32
    %c0_i32_1 = arith.constant 0 : i32
    return %c0_i32, %c0_i32_0 : i32, i32
  }
  func.func @transform_6(%arg0: i32) -> (i32, i32) {
    %c0_i32 = arith.constant 0 : i32
    %c0_i32_0 = arith.constant 0 : i32
    %c0_i32_1 = arith.constant 0 : i32
    return %c0_i32, %c0_i32_0 : i32, i32
  }
  func.func @transform_7(%arg0: i32) -> (i32, i32) {
    %c0_i32 = arith.constant 0 : i32
    %c0_i32_0 = arith.constant 0 : i32
    return %arg0, %c0_i32 : i32, i32
  }
  func.func @transform_8(%arg0: i32) -> (i32, i32) {
    %c0_i32 = arith.constant 0 : i32
    %c0_i32_0 = arith.constant 0 : i32
    return %arg0, %c0_i32 : i32, i32
  }
  func.func @transform_9(%arg0: i32) -> (i32, i32) {
    %c0_i32 = arith.constant 0 : i32
    %c0_i32_0 = arith.constant 0 : i32
    return %arg0, %c0_i32 : i32, i32
  }
  func.func @transform_10(%arg0: i32) -> (i32, i32) {
    %c0_i32 = arith.constant 0 : i32
    %c0_i32_0 = arith.constant 0 : i32
    return %arg0, %c0_i32 : i32, i32
  }
}

</mosaic_0001>

<bundles_post_ra>
// kernel: tpu_custom_call.1
= control target key start
LH: loop header
LB: loop body
LE: loop exit
PB: predicated region body
PF: predicated region fallthrough
CT: control target
= control target key end

     0   :  { %15 = vsyncpa [#allocation3], 0  ;;  %s2694_s0 = inlined_call_operand.vmem [shape: bf16[256,32], index: 0, kind: input, shape index: {}]   ;;  %s2695_s1 = inlined_call_operand.vmem [shape: bf16[32,128], index: 1, kind: input, shape index: {}]   ;;  %s2696_s2 = inlined_call_operand.vmem [shape: f32[1,128], index: 2, kind: input, shape index: {}]   ;;  %s2697_s3 = inlined_call_operand.vmem [shape: bf16[128,32], index: 3, kind: input, shape index: {}]   ;;  %s2698_s4 = inlined_call_operand.vmem [shape: f32[1,32], index: 4, kind: input, shape index: {}]   ;;  %s2699_s5 = inlined_call_operand.vmem [shape: bf16[32,16], index: 5, kind: input, shape index: {}]   ;;  %s2700_s6 = inlined_call_operand.vmem [shape: f32[1,16], index: 6, kind: input, shape index: {}]   ;;  %s2701_s7 = inlined_call_operand.vmem [shape: bf16[256,128], index: 7, kind: input, shape index: {}]   ;;  %s2702_s8 = inlined_call_operand.vmem [shape: bf16[256,32], index: 8, kind: input, shape index: {}]   ;;  %s2703_s9 = inlined_call_operand.vmem [shape: f32[256,8], index: 9, kind: input, shape index: {}]   ;;  %s2704_s10 = inlined_call_operand.hbm [shape: f32[256,128], index: 10, kind: output, shape index: {}]  }
   0x1   :  { %17 = vsyncpa [#allocation3 + $0x1], 0  ;;  %s2254_s13 = smov 0   ;;  %s2256_s14 = smov 0  }
   0x2   :  { %s2258_s15 = smov 0   ;;  %s2260_s16 = smov 0  }
   0x3 LB: > { %s2275_s17 = sadd.s32 4294967295, %s2192_s16   ;;  %s1631_s18 = sadd.s32 4294967294, %s2192_s16   ;;  %s2192_s16 = sphi %s2260_s16, %s2710_s16   ;;  %s2188_s15 = sphi %s2258_s15, %s2709_s15   ;;  %s2184_s14 = sphi %s2256_s14, %s2708_s14   ;;  %s2180_s13 = sphi %s2254_s13, %s2707_s13  }
   0x4   : > { %s2279_s19 = sadd.s32 1, %s2192_s16   ;;  %s260_s20 = sadd.s32 1, %s2188_s15 }
   0x5   : > { %s257_s21 = ssub.s32 %s2192_s16, %s2279_s19  ;;  %p270_p0 = scmp.ne.s32.totalorder %s2188_s15, %s2184_s14 }
   0x6   : > { %p258_p1 = scmp.eq.s32.totalorder %s257_s21, 0  ;;  %p271_p2 = scmp.eq.s32.totalorder %s2275_s17, 1 }
   0x7   : > { %p276_p3 = scmp.ne.s32.totalorder %s2184_s14, %s2180_s13  ;;  %p277_p4 = scmp.eq.s32.totalorder %s1631_s18, 1 }
   0x8   : > { %s2290_s22 = scalar_select %p258_p1, %s2188_s15, %s260_s20  }
   0x9   : > { %p2292_p5 = por %p271_p2, %p270_p0  ;;  %p2296_p6 = por %p277_p4, %p276_p3 }
   0xa   : > { %p1634_p7 = scmp.ge.s32.totalorder %s2192_s16, 1  ;;  %p349_p8 = scmp.lt.s32.totalorder %s2192_s16, 3 }
   0xc   : > { %p350_p9 = pnand %p1634_p7, %p349_p8 }
   0xd   : > { %v1950_v0 = vld [vmem:[%s2695_s1] sm:$0xff] (!%p350_p9)   ;;  %s1636_s27 = sshll.u32 (!%p350_p9), %s2275_s17, 4  ;;  %v1951_v1 = vld [vmem:[%s2695_s1 + $0x8] sm:$0xff] (!%p350_p9)   ;;  %vm507_vm0 = vcmask (!%p350_p9), 261120   ;;  %v1962_v12 = vld [vmem:[%s2697_s3 + $0x10] sm:$0xff] (!%p350_p9)   ;;  %s2194_s28 = smov (!%p350_p9), 120  }
   0xe   : > { %353 = sbr.rel (%p350_p9) target bundleno = 1034 (0x40a), region = 60  ;;  %p403_p10 = scmp.lt.s32.totalorder (!%p350_p9), %s1636_s27, 31  ;;  %1835 = vmatprep.subr.bf16.mxu0 (!%p350_p9), %v1950_v0  ;;  %v1960_v10 = vld [vmem:[%s2697_s3] sm:$0xff] (!%p350_p9)   ;;  %v1961_v11 = vld [vmem:[%s2697_s3 + $0x8] sm:$0xff] (!%p350_p9)   ;;  %v1963_v13 = vld [vmem:[%s2697_s3 + $0x18] sm:$0xff] (!%p350_p9)   ;;  %vm1469_vm1 = vcmask (!%p350_p9), 130048  }
   0xf   : > { %1836 = vmatpush3.bf16.msra.mxu0 (!%p350_p9), %v1950_v0  ;;  %1855 = vmatprep.subr.bf16.mxu1 (!%p350_p9), %v1960_v10  ;;  %v1964_v14 = vld [vmem:[%s2697_s3 + $0x20] sm:$0xff] (!%p350_p9)   ;;  %v1965_v15 = vld [vmem:[%s2697_s3 + $0x28] sm:$0xff] (!%p350_p9)   ;;  %v1966_v16 = vld [vmem:[%s2697_s3 + $0x30] sm:$0xff] (!%p350_p9)   ;;  %s399_s20 = sand.u32 (!%p350_p9), 1, %s2184_s14   ;;  %vm1486_vm2 = vcmask (!%p350_p9), 195584  }
  0x10   : > { %1837 = vmatprep.subr.bf16.mxu0 (!%p350_p9), %v1951_v1  ;;  %1856 = vmatpush3.bf16.msra.mxu1 (!%p350_p9), %v1960_v10  ;;  %v1967_v17 = vld [vmem:[%s2697_s3 + $0x38] sm:$0xff] (!%p350_p9)   ;;  %v2353_v18 = vld [vmem:[%s2696_s2] ss:$0 sm:$0xff] (!%p350_p9)  ;;  %s1635_s21 = sshll.u32 (!%p350_p9), %s399_s20, 7 }
  0x11   : > { %1857 = vmatprep.subr.bf16.mxu1 (!%p350_p9), %v1961_v11 }
  0x13   : > { %1838 = vmatpush3.bf16.msra.mxu0 (!%p350_p9), %v1951_v1 }
  0x14   : > { %1858 = vmatpush3.bf16.msra.mxu1 (!%p350_p9), %v1961_v11 }
  0x15   : > { %s2712_s27 = smov (!%p403_p10, %s1636_s27), 31  ;;  %1859 = vmatprep.subr.bf16.mxu1 %v1962_v12 }
  0x16   : > { %s2312_s30 = sshll.u32 %s2712_s27, 2  ;;  %s1643_s29 = sshll.u32 %s2712_s27, 3 }
  0x17   : > { %s406_s18 = scalar_lea.vmem %s2694_s0, %s2312_s30  ;;  %s2369_s25 = scalar_lea.vmem %s2701_s7, %s2312_s30 }
  0x18   : > { %v1952_v2 = vld [vmem:[%s406_s18] sm:$0xff]   ;;  %v1953_v3 = vld [vmem:[%s406_s18 + $0x8] sm:$0xff]   ;;  %v1954_v4 = vld [vmem:[%s406_s18 + $0x10] sm:$0xff]   ;;  %1860 = vmatpush3.bf16.msra.mxu1 %v1962_v12  ;;  %s2195_s27 = smov 16  }
  0x19   : > { %1839 = vmatprep.mubr.msk.bf16.mxu0 %vm507_vm0, %v1952_v2  ;;  %v1955_v5 = vld [vmem:[%s406_s18 + $0x18] sm:$0xff]   ;;  %v1956_v6 = vld [vmem:[%s406_s18 + $0x20] sm:$0xff]   ;;  %v1957_v7 = vld [vmem:[%s406_s18 + $0x28] sm:$0xff]   ;;  %1861 = vmatprep.subr.bf16.mxu1 %v1963_v13 }
  0x1a   : > { %1840 = vmatmul.mubr.msk.bf16.vlgmr.msra.gmra.mrb[0].mxu0 %vm507_vm0, %v1953_v3  ;;  %v1958_v8 = vld [vmem:[%s406_s18 + $0x30] sm:$0xff]   ;;  %v1959_v9 = vld [vmem:[%s406_s18 + $0x38] sm:$0xff]   ;;  %v1785_v62 = vld [vmem:[%s2369_s25 + $0x8] sm:$0xff]   ;;  %s2523_s18 = scalar_lea.vmem %s2703_s9, %s1643_s29 }
  0x1b   : > { %1843 = vmatprep.mubr.msk.bf16.mxu0 %vm507_vm0, %v1954_v4  ;;  %v1722_v0 = vld [vmem:[%s2369_s25] sm:$0xff]  }
  0x1c   : > { %1862 = vmatpush3.bf16.msra.mxu1 %v1963_v13  ;;  %v1723_v10 = vunpack.c.l.bf16 %v1722_v0 }
  0x1d   : > { %1863 = vmatprep.subr.bf16.mxu1 %v1964_v14 }
  0x20   : > { %1864 = vmatpush3.bf16.msra.mxu1 %v1964_v14 }
  0x21   : > { %1865 = vmatprep.subr.bf16.mxu1 %v1965_v15 }
  0x22   : > { %1844 = vmatmul.mubr.msk.bf16.gmra.mrb[4].mxu0 %vm507_vm0, %v1955_v5  ;;  %v1727_v5 = vunpack.c.l.bf16 %v1785_v62 }
  0x23   : > { %1847 = vmatprep.mubr.msk.bf16.mxu0 %vm507_vm0, %v1956_v6 }
  0x24   : > { %1866 = vmatpush3.bf16.msra.mxu1 %v1965_v15  ;;  %v1728_v15 = vunpack.c.h.bf16 %v1785_v62 }
  0x25   : > { %1867 = vmatprep.subr.bf16.mxu1 %v1966_v16 }
  0x28   : > { %1868 = vmatpush3.bf16.msra.mxu1 %v1966_v16 }
  0x29   : > { %1869 = vmatprep.subr.bf16.mxu1 %v1967_v17 }
  0x2a   : > { %1848 = vmatmul.mubr.msk.bf16.gmra.mrb[8].mxu0 %vm507_vm0, %v1957_v7 }
  0x2b   : > { %1851 = vmatprep.mubr.msk.bf16.mxu0 %vm507_vm0, %v1958_v8 }
  0x2c   : > { %1870 = vmatpush3.bf16.msra.mxu1 %v1967_v17 }
  0x32   : > { %1852 = vmatmul.mubr.msk.bf16.gmra.mrb[12].mxu0 %vm507_vm0, %v1959_v9 }
  0xed   : > { %v1841_v19 = vpop.f32.mrb[0].mxu0 }
  0xee   : > { %v575_v20 = vadd.f32 %v1841_v19, %v2353_v18  ;;  %v566_v21 = vpop.f32.mrb[1].mxu0 }
  0xef   : > { %v567_v22 = vadd.f32 %v2353_v18, %v566_v21  ;;  %v1842_v23 = vpop.f32.mrb[2].mxu0 }
  0xf0   : > { %v1665_v24 = vmul.f32 -1.442695, %v575_v20  ;;  %v578_v25 = vadd.f32 %v1842_v23, %v2353_v18  ;;  %v569_v26 = vpop.f32.mrb[3].mxu0 }
  0xf1   : > { %v1663_v27 = vmul.f32 -1.442695, %v567_v22  ;;  %v570_v28 = vadd.f32 %v2353_v18, %v569_v26 }
  0xf2   : > { %1970 = vpow2.f32 %v1665_v24  ;;  %v1666_v29 = vmul.f32 -1.442695, %v578_v25  ;;  %v1724_v24 = vunpack.c.h.bf16 %v1722_v0 }
  0xf3   : > { %1972 = vpow2.f32 %v1663_v27  ;;  %v1664_v30 = vmul.f32 -1.442695, %v570_v28 }
  0xf4   : > { %1974 = vpow2.f32 %v1666_v29  ;;  %v1787_v29 = vld [vmem:[%s2369_s25 + $0x18] sm:$0xff]  }
  0xf5   : > { %1976 = vpow2.f32 %v1664_v30  ;;  %v1845_v31 = vpop.f32.mrb[4].mxu0 }
  0xf6   : > { %v591_v32 = vadd.f32 %v1845_v31, %v2353_v18  ;;  %v582_v33 = vpop.f32.mrb[5].mxu0 }
  0xf7   : > { %v583_v34 = vadd.f32 %v2353_v18, %v582_v33  ;;  %v1846_v35 = vpop.f32.mrb[6].mxu0 }
  0xf8   : > { %v1669_v36 = vmul.f32 -1.442695, %v591_v32  ;;  %v594_v37 = vadd.f32 %v1846_v35, %v2353_v18  ;;  %v585_v38 = vpop.f32.mrb[7].mxu0 }
  0xf9   : > { %v1667_v39 = vmul.f32 -1.442695, %v583_v34  ;;  %v586_v40 = vadd.f32 %v2353_v18, %v585_v38  ;;  %v1786_v38 = vld [vmem:[%s2369_s25 + $0x10] sm:$0xff]  }
  0xfa   : > { %1978 = vpow2.f32 %v1669_v36  ;;  %v1670_v41 = vmul.f32 -1.442695, %v594_v37 }
  0xfb   : > { %1980 = vpow2.f32 %v1667_v39  ;;  %v1668_v42 = vmul.f32 -1.442695, %v586_v40  ;;  %v1735_v39 = vunpack.c.l.bf16 %v1787_v29 }
  0xfc   : > { %v1971_v43 = vpop.eup %1970  ;;  %1982 = vpow2.f32 %v1670_v41 }
  0xfd   : > { %v1973_v44 = vpop.eup %1972  ;;  %v679_v45 = vadd.f32 1.0, %v1971_v43  ;;  %1984 = vpow2.f32 %v1668_v42  ;;  %v1849_v46 = vpop.f32.mrb[8].mxu0 }
  0xfe   : > { %v1975_v47 = vpop.eup %1974  ;;  %v677_v48 = vadd.f32 1.0, %v1973_v44  ;;  %v607_v49 = vadd.f32 %v1849_v46, %v2353_v18  ;;  %v598_v50 = vpop.f32.mrb[9].mxu0 }
  0xff   : > { %v1977_v51 = vpop.eup %1976  ;;  %1986 = vrcp.f32 %v679_v45  ;;  %v680_v52 = vadd.f32 1.0, %v1975_v47  ;;  %v599_v53 = vadd.f32 %v2353_v18, %v598_v50  ;;  %v1850_v54 = vpop.f32.mrb[10].mxu0  ;;  %v1736_v45 = vunpack.c.h.bf16 %v1787_v29 }
 0x100   : > { %1988 = vrcp.f32 %v677_v48  ;;  %v678_v55 = vadd.f32 1.0, %v1977_v51  ;;  %v1673_v56 = vmul.f32 -1.442695, %v607_v49  ;;  %v610_v57 = vadd.f32 %v1850_v54, %v2353_v18  ;;  %v601_v58 = vpop.f32.mrb[11].mxu0 }
 0x101   : > { %1990 = vrcp.f32 %v680_v52  ;;  %v1671_v59 = vmul.f32 -1.442695, %v599_v53  ;;  %v602_v60 = vadd.f32 %v2353_v18, %v601_v58  ;;  %v1731_v48 = vunpack.c.l.bf16 %v1786_v38 }
 0x102   : > { %1992 = vrcp.f32 %v678_v55  ;;  %v1674_v61 = vmul.f32 -1.442695, %v610_v57  ;;  %v1732_v49 = vunpack.c.h.bf16 %v1786_v38  ;;  %v1789_v55 = vld [vmem:[%s2369_s25 + $0x28] sm:$0xff]  }
 0x103   : > { %1994 = vpow2.f32 %v1673_v56  ;;  %v1672_v63 = vmul.f32 -1.442695, %v602_v60 }
 0x104   : > { %v1979_v1 = vpop.eup %1978  ;;  %1996 = vpow2.f32 %v1671_v59 }
 0x105   : > { %v1981_v2 = vpop.eup %1980  ;;  %v683_v3 = vadd.f32 1.0, %v1979_v1  ;;  %1998 = vpow2.f32 %v1674_v61  ;;  %v1853_v4 = vpop.f32.mrb[12].mxu0  ;;  %v1788_v1 = vld [vmem:[%s2369_s25 + $0x20] sm:$0xff]  }
 0x106   : > { %v1983_v6 = vpop.eup %1982  ;;  %v681_v7 = vadd.f32 1.0, %v1981_v2  ;;  %2000 = vpow2.f32 %v1672_v63  ;;  %v623_v8 = vadd.f32 %v1853_v4, %v2353_v18  ;;  %v614_v9 = vpop.f32.mrb[13].mxu0  ;;  %v1743_v2 = vunpack.c.l.bf16 %v1789_v55 }
 0x107   : > { %v1985_v11 = vpop.eup %1984  ;;  %2002 = vrcp.f32 %v683_v3  ;;  %v684_v12 = vadd.f32 1.0, %v1983_v6  ;;  %v615_v13 = vadd.f32 %v2353_v18, %v614_v9  ;;  %v1854_v14 = vpop.f32.mrb[14].mxu0  ;;  %v1744_v6 = vunpack.c.h.bf16 %v1789_v55 }
 0x108   : > { %2004 = vrcp.f32 %v681_v7  ;;  %v682_v16 = vadd.f32 1.0, %v1985_v11  ;;  %v1677_v17 = vmul.f32 -1.442695, %v623_v8  ;;  %v626_v19 = vadd.f32 %v1854_v14, %v2353_v18  ;;  %v617_v20 = vpop.f32.mrb[15].mxu0 }
 0x109   : > { %v1987_v21 = vpop.eup %1986  ;;  %2006 = vrcp.f32 %v684_v12  ;;  %v1675_v22 = vmul.f32 -1.442695, %v615_v13  ;;  %v618_v23 = vadd.f32 %v2353_v18, %v617_v20  ;;  %v1739_v8 = vunpack.c.l.bf16 %v1788_v1  ;;  %v1791_v13 = vld [vmem:[%s2369_s25 + $0x38] sm:$0xff]   ;;  %v1790_v20 = vld [vmem:[%s2369_s25 + $0x30] sm:$0xff]   ;;  %s2409_s25 = scalar_lea.vmem %s2702_s8, %s2312_s30  ;;  %s1720_s30 = sshll.u32 %s2275_s17, 11 }
 0x10a   : > { %v1989_v25 = vpop.eup %1988  ;;  %2008 = vrcp.f32 %v682_v16  ;;  %v1678_v26 = vmul.f32 -1.442695, %v626_v19  ;;  %v759_v31 = vmul.f32 %v1987_v21, %v1727_v5  ;;  %v1740_v9 = vunpack.c.h.bf16 %v1788_v1  ;;  %s2642_s11 = scalar_lea.hbm %s2704_s10, %s1720_s30  ;;  %s2653_s17 = scalar_lea.sflag [#allocation3], %s399_s20 }
 0x10b   : > { %v1991_v27 = vpop.eup %1990  ;;  %2010 = vpow2.f32 %v1677_v17  ;;  %v1676_v28 = vmul.f32 -1.442695, %v618_v23  ;;  %v757_v34 = vmul.f32 %v1989_v25, %v1723_v10  ;;  %v1751_v21 = vunpack.c.l.bf16 %v1791_v13 }
 0x10c   : > { %v1993_v30 = vpop.eup %1992  ;;  %2012 = vpow2.f32 %v1675_v22  ;;  %v760_v32 = vmul.f32 %v1991_v27, %v1728_v15  ;;  %v1752_v23 = vunpack.c.h.bf16 %v1791_v13  ;;  %v1747_v25 = vunpack.c.l.bf16 %v1790_v20 }
 0x10d   : > { %v1995_v33 = vpop.eup %1994  ;;  %2014 = vpow2.f32 %v1678_v26  ;;  %v758_v35 = vmul.f32 %v1993_v30, %v1724_v24  ;;  %v1748_v26 = vunpack.c.h.bf16 %v1790_v20 }
 0x10e   : > { %v1997_v36 = vpop.eup %1996  ;;  %v687_v37 = vadd.f32 1.0, %v1995_v33  ;;  %2016 = vpow2.f32 %v1676_v28  ;;  %v774_v18 = vpack.c.bf16 %v760_v32, %v759_v31 }
 0x10f   : > { %v1999_v40 = vpop.eup %1998  ;;  %v685_v41 = vadd.f32 1.0, %v1997_v36  ;;  %v773_v42 = vpack.c.bf16 %v758_v35, %v757_v34  ;;  %v1968_v36 = vld [vmem:[%s2699_s5] sm:$0xff]  }
 0x110   : > { %v2001_v43 = vpop.eup %2000  ;;  %2018 = vrcp.f32 %v687_v37  ;;  %v688_v44 = vadd.f32 1.0, %v1999_v40  ;;  %1887 = vmatprep.subr.bf16.mxu0 %v1968_v36  ;;  %v1969_v37 = vld [vmem:[%s2699_s5 + $0x8] sm:$0xff]  }
 0x111   : > { %v2003_v46 = vpop.eup %2002  ;;  %2020 = vrcp.f32 %v685_v41  ;;  %v686_v47 = vadd.f32 1.0, %v2001_v43  ;;  %1871 = vmatprep.mubr.bf16.mxu1 %v773_v42  ;;  %1888 = vmatpush3.bf16.msra.mxu0 %v1968_v36 }
 0x112   : > { %v2005_v50 = vpop.eup %2004  ;;  %2022 = vrcp.f32 %v688_v44  ;;  %1872 = vmatmul.mubr.bf16.vlgmr.msra.gmra.mrb[0].mxu1 %v774_v18  ;;  %v763_v51 = vmul.f32 %v2003_v46, %v1735_v39  ;;  %1889 = vmatprep.subr.bf16.mxu0 %v1969_v37  ;;  %v2394_v18 = vld [vmem:[%s2698_s4] ss:$0 sm:$0xff] }
 0x113   : > { %v2007_v52 = vpop.eup %2006  ;;  %2024 = vrcp.f32 %v686_v47  ;;  %v761_v57 = vmul.f32 %v2005_v50, %v1731_v48 }
 0x114   : > { %v2009_v53 = vpop.eup %2008  ;;  %v764_v54 = vmul.f32 %v2007_v52, %v1736_v45 }
 0x115   : > { %v2011_v56 = vpop.eup %2010  ;;  %v762_v58 = vmul.f32 %v2009_v53, %v1732_v49  ;;  %1890 = vmatpush3.bf16.msra.mxu0 %v1969_v37 }
 0x116   : > { %v2013_v59 = vpop.eup %2012  ;;  %v691_v60 = vadd.f32 1.0, %v2011_v56  ;;  %v776_v61 = vpack.c.bf16 %v764_v54, %v763_v51 }
 0x117   : > { %v2015_v62 = vpop.eup %2014  ;;  %v689_v63 = vadd.f32 1.0, %v2013_v59  ;;  %v775_v0 = vpack.c.bf16 %v762_v58, %v761_v57 }
 0x118   : > { %v2017_v3 = vpop.eup %2016  ;;  %2026 = vrcp.f32 %v691_v60  ;;  %v692_v4 = vadd.f32 1.0, %v2015_v62 }
 0x119   : > { %2028 = vrcp.f32 %v689_v63  ;;  %v690_v5 = vadd.f32 1.0, %v2017_v3  ;;  %1875 = vmatprep.mubr.bf16.mxu1 %v775_v0 }
 0x11a   : > { %v2019_v7 = vpop.eup %2018  ;;  %2030 = vrcp.f32 %v692_v4  ;;  %1876 = vmatmul.mubr.bf16.gmra.mrb[4].mxu1 %v776_v61 }
 0x11b   : > { %v2021_v10 = vpop.eup %2020  ;;  %2032 = vrcp.f32 %v690_v5  ;;  %v767_v11 = vmul.f32 %v2019_v7, %v1743_v2 }
 0x11c   : > { %v2023_v12 = vpop.eup %2022  ;;  %v765_v16 = vmul.f32 %v2021_v10, %v1739_v8 }
 0x11d   : > { %v2025_v14 = vpop.eup %2024  ;;  %v768_v15 = vmul.f32 %v2023_v12, %v1744_v6 }
 0x11e   : > { %v766_v17 = vmul.f32 %v2025_v14, %v1740_v9 }
 0x11f   : > { %v778_v19 = vpack.c.bf16 %v768_v15, %v767_v11 }
 0x120   : > { %v777_v22 = vpack.c.bf16 %v766_v17, %v765_v16  ;;  %v1792_v16 = vld [vmem:[%s2409_s25 + $0x8] sm:$0xff]  }
 0x122   : > { %v2027_v24 = vpop.eup %2026  ;;  %1879 = vmatprep.mubr.bf16.mxu1 %v777_v22 }
 0x123   : > { %v2029_v27 = vpop.eup %2028  ;;  %1880 = vmatmul.mubr.bf16.gmra.mrb[8].mxu1 %v778_v19  ;;  %v771_v28 = vmul.f32 %v2027_v24, %v1751_v21 }
 0x124   : > { %v2031_v29 = vpop.eup %2030  ;;  %v769_v32 = vmul.f32 %v2029_v27, %v1747_v25  ;;  %v1759_v25 = vunpack.c.l.bf16 %v1792_v16 }
 0x125   : > { %v2033_v30 = vpop.eup %2032  ;;  %v772_v31 = vmul.f32 %v2031_v29, %v1752_v23  ;;  %v1754_v23 = vld [vmem:[%s2409_s25] sm:$0xff]   ;;  %v1760_v29 = vunpack.c.h.bf16 %v1792_v16  ;;  %v1796_v16 = vld [vmem:[%s2409_s25 + $0x28] sm:$0xff]  }
 0x126   : > { %v770_v33 = vmul.f32 %v2033_v30, %v1748_v26  ;;  %v1755_v36 = vunpack.c.l.bf16 %v1754_v23 }
 0x127   : > { %v780_v34 = vpack.c.bf16 %v772_v31, %v771_v28 }
 0x128   : > { %v779_v35 = vpack.c.bf16 %v770_v33, %v769_v32 }
 0x12a   : > { %1883 = vmatprep.mubr.bf16.mxu1 %v779_v35 }
 0x12b   : > { %1884 = vmatmul.mubr.bf16.gmra.mrb[12].mxu1 %v780_v34 }
 0x1e5   : > { %v1873_v38 = vpop.f32.mrb[0].mxu1 }
 0x1e6   : > { %v895_v39 = vadd.f32 %v1873_v38, %v2394_v18  ;;  %v886_v40 = vpop.f32.mrb[1].mxu1 }
 0x1e7   : > { %v887_v41 = vadd.f32 %v2394_v18, %v886_v40  ;;  %v1874_v42 = vpop.f32.mrb[2].mxu1 }
 0x1e8   : > { %v1690_v43 = vmul.f32 -1.442695, %v895_v39  ;;  %v898_v44 = vadd.f32 %v1874_v42, %v2394_v18  ;;  %v889_v45 = vpop.f32.mrb[3].mxu1 }
 0x1e9   : > { %v1688_v46 = vmul.f32 -1.442695, %v887_v41  ;;  %v890_v47 = vadd.f32 %v2394_v18, %v889_v45  ;;  %v1756_v41 = vunpack.c.h.bf16 %v1754_v23 }
 0x1ea   : > { %2034 = vpow2.f32 %v1690_v43  ;;  %v1691_v48 = vmul.f32 -1.442695, %v898_v44 }
 0x1eb   : > { %2036 = vpow2.f32 %v1688_v46  ;;  %v1689_v49 = vmul.f32 -1.442695, %v890_v47 }
 0x1ec   : > { %2038 = vpow2.f32 %v1691_v48 }
 0x1ed   : > { %2040 = vpow2.f32 %v1689_v49  ;;  %v1877_v50 = vpop.f32.mrb[4].mxu1 }
 0x1ee   : > { %v911_v51 = vadd.f32 %v1877_v50, %v2394_v18  ;;  %v902_v52 = vpop.f32.mrb[5].mxu1 }
 0x1ef   : > { %v903_v53 = vadd.f32 %v2394_v18, %v902_v52  ;;  %v1878_v54 = vpop.f32.mrb[6].mxu1 }
 0x1f0   : > { %v1694_v55 = vmul.f32 -1.442695, %v911_v51  ;;  %v914_v56 = vadd.f32 %v1878_v54, %v2394_v18  ;;  %v905_v57 = vpop.f32.mrb[7].mxu1  ;;  %v1794_v54 = vld [vmem:[%s2409_s25 + $0x18] sm:$0xff]  }
 0x1f1   : > { %v1692_v58 = vmul.f32 -1.442695, %v903_v53  ;;  %v906_v59 = vadd.f32 %v2394_v18, %v905_v57 }
 0x1f2   : > { %2042 = vpow2.f32 %v1694_v55  ;;  %v1695_v60 = vmul.f32 -1.442695, %v914_v56 }
 0x1f3   : > { %2044 = vpow2.f32 %v1692_v58  ;;  %v1693_v61 = vmul.f32 -1.442695, %v906_v59  ;;  %v1793_v58 = vld [vmem:[%s2409_s25 + $0x10] sm:$0xff]  }
 0x1f4   : > { %v2035_v62 = vpop.eup %2034  ;;  %2046 = vpow2.f32 %v1695_v60 }
 0x1f5   : > { %v2037_v63 = vpop.eup %2036  ;;  %v999_v0 = vadd.f32 1.0, %v2035_v62  ;;  %2048 = vpow2.f32 %v1693_v61 }
 0x1f6   : > { %v2039_v1 = vpop.eup %2038  ;;  %v997_v2 = vadd.f32 1.0, %v2037_v63  ;;  %v1881_v3 = vpop.f32.mrb[8].mxu1  ;;  %v1767_v63 = vunpack.c.l.bf16 %v1794_v54 }
 0x1f7   : > { %v2041_v4 = vpop.eup %2040  ;;  %2050 = vrcp.f32 %v999_v0  ;;  %v1000_v5 = vadd.f32 1.0, %v2039_v1  ;;  %v927_v6 = vadd.f32 %v1881_v3, %v2394_v18  ;;  %v918_v7 = vpop.f32.mrb[9].mxu1  ;;  %v1768_v0 = vunpack.c.h.bf16 %v1794_v54 }
 0x1f8   : > { %2052 = vrcp.f32 %v997_v2  ;;  %v998_v8 = vadd.f32 1.0, %v2041_v4  ;;  %v919_v9 = vadd.f32 %v2394_v18, %v918_v7  ;;  %v1882_v10 = vpop.f32.mrb[10].mxu1  ;;  %v1763_v3 = vunpack.c.l.bf16 %v1793_v58 }
 0x1f9   : > { %2054 = vrcp.f32 %v1000_v5  ;;  %v1698_v11 = vmul.f32 -1.442695, %v927_v6  ;;  %v930_v12 = vadd.f32 %v1882_v10, %v2394_v18  ;;  %v921_v13 = vpop.f32.mrb[11].mxu1  ;;  %v1764_v4 = vunpack.c.h.bf16 %v1793_v58 }
 0x1fa   : > { %2056 = vrcp.f32 %v998_v8  ;;  %v1696_v14 = vmul.f32 -1.442695, %v919_v9  ;;  %v922_v15 = vadd.f32 %v2394_v18, %v921_v13 }
 0x1fb   : > { %2058 = vpow2.f32 %v1698_v11  ;;  %v1699_v17 = vmul.f32 -1.442695, %v930_v12 }
 0x1fc   : > { %v2043_v19 = vpop.eup %2042  ;;  %2060 = vpow2.f32 %v1696_v14  ;;  %v1697_v20 = vmul.f32 -1.442695, %v922_v15 }
 0x1fd   : > { %v2045_v21 = vpop.eup %2044  ;;  %v1003_v22 = vadd.f32 1.0, %v2043_v19  ;;  %2062 = vpow2.f32 %v1699_v17 }
 0x1fe   : > { %v2047_v24 = vpop.eup %2046  ;;  %v1001_v26 = vadd.f32 1.0, %v2045_v21  ;;  %2064 = vpow2.f32 %v1697_v20  ;;  %v1885_v27 = vpop.f32.mrb[12].mxu1  ;;  %v1795_v21 = vld [vmem:[%s2409_s25 + $0x20] sm:$0xff]  }
 0x1ff   : > { %v2049_v28 = vpop.eup %2048  ;;  %2066 = vrcp.f32 %v1003_v22  ;;  %v1004_v30 = vadd.f32 1.0, %v2047_v24  ;;  %v943_v31 = vadd.f32 %v1885_v27, %v2394_v18  ;;  %v934_v32 = vpop.f32.mrb[13].mxu1 }
 0x200   : > { %2068 = vrcp.f32 %v1001_v26  ;;  %v1002_v33 = vadd.f32 1.0, %v2049_v28  ;;  %v935_v34 = vadd.f32 %v2394_v18, %v934_v32  ;;  %v1886_v35 = vpop.f32.mrb[14].mxu1  ;;  %v1776_v26 = vunpack.c.h.bf16 %v1796_v16 }
 0x201   : > { %v2051_v37 = vpop.eup %2050  ;;  %2070 = vrcp.f32 %v1004_v30  ;;  %v1702_v38 = vmul.f32 -1.442695, %v943_v31  ;;  %v946_v39 = vadd.f32 %v1886_v35, %v2394_v18  ;;  %v937_v40 = vpop.f32.mrb[15].mxu1  ;;  %v1771_v28 = vunpack.c.l.bf16 %v1795_v21 }
 0x202   : > { %v2053_v42 = vpop.eup %2052  ;;  %2072 = vrcp.f32 %v1002_v33  ;;  %v1700_v43 = vmul.f32 -1.442695, %v935_v34  ;;  %v938_v44 = vadd.f32 %v2394_v18, %v937_v40  ;;  %v1079_v48 = vmul.f32 %v2051_v37, %v1759_v25  ;;  %v1798_v37 = vld [vmem:[%s2409_s25 + $0x38] sm:$0xff]  }
 0x203   : > { %v2055_v45 = vpop.eup %2054  ;;  %2074 = vpow2.f32 %v1702_v38  ;;  %v1703_v46 = vmul.f32 -1.442695, %v946_v39  ;;  %v1077_v52 = vmul.f32 %v2053_v42, %v1755_v36  ;;  %v1775_v25 = vunpack.c.l.bf16 %v1796_v16  ;;  %v1797_v39 = vld [vmem:[%s2409_s25 + $0x30] sm:$0xff]   ;;  %s2579_s25 = scalar_lea.vmem [#allocation2], %s1635_s21 }
 0x204   : > { %v2057_v47 = vpop.eup %2056  ;;  %v1080_v49 = vmul.f32 %v2055_v45, %v1760_v29  ;;  %2076 = vpow2.f32 %v1700_v43  ;;  %v1701_v50 = vmul.f32 -1.442695, %v938_v44  ;;  %v1772_v29 = vunpack.c.h.bf16 %v1795_v21  ;;  %s1533_s26 = sshll.u32 %s2579_s25, 4  ;;  %s2644_s26 = int_to_ptr.vmem [resolvable:$true] %s1533_s26 }
 0x205   : > { %v2059_v51 = vpop.eup %2058  ;;  %2078 = vpow2.f32 %v1703_v46  ;;  %v1078_v53 = vmul.f32 %v2057_v47, %v1756_v41  ;;  %v1783_v41 = vunpack.c.l.bf16 %v1798_v37  ;;  %v1784_v42 = vunpack.c.h.bf16 %v1798_v37  ;;  %s2130_s12 = scalar_lea.vmem %s2644_s26, 2048 }
 0x206   : > { %v2061_v55 = vpop.eup %2060  ;;  %v1007_v56 = vadd.f32 1.0, %v2059_v51  ;;  %2080 = vpow2.f32 %v1701_v50  ;;  %v1094_v57 = vpack.c.bf16 %v1080_v49, %v1079_v48  ;;  %v1779_v44 = vunpack.c.l.bf16 %v1797_v39  ;;  %p2131_p11 = scmp.ne.s32.totalorder %s2644_s26, %s2130_s12 }
 0x207   : > { %v2063_v18 = vpop.eup %2062  ;;  %v1005_v59 = vadd.f32 1.0, %v2061_v55  ;;  %v1093_v60 = vpack.c.bf16 %v1078_v53, %v1077_v52  ;;  %v1780_v45 = vunpack.c.h.bf16 %v1797_v39  ;;  %v2437_v55 = vld [vmem:[%s2700_s6] ss:$0 sm:$0xff] }
 0x208   : > { %v2065_v61 = vpop.eup %2064  ;;  %2082 = vrcp.f32 %v1007_v56  ;;  %v1008_v62 = vadd.f32 1.0, %v2063_v18  ;;  %p2132_p12 = pnand %p2131_p11, %p2292_p5 }
 0x209   : > { %v2067_v1 = vpop.eup %2066  ;;  %2084 = vrcp.f32 %v1005_v59  ;;  %v1006_v2 = vadd.f32 1.0, %v2065_v61  ;;  %1891 = vmatprep.mubr.msk.bf16.mxu0 %vm507_vm0, %v1093_v60 }
 0x20a   : > { %v2069_v5 = vpop.eup %2068  ;;  %2086 = vrcp.f32 %v1008_v62  ;;  %1892 = vmatmul.mubr.msk.bf16.vlgmr.msra.gmra.mrb[16].mxu0 %vm507_vm0, %v1094_v57  ;;  %v1083_v8 = vmul.f32 %v2067_v1, %v1767_v63  ;;  %p2133_p13 = pneg %p2132_p12 }
 0x20b   : > { %v2071_v6 = vpop.eup %2070  ;;  %2088 = vrcp.f32 %v1006_v2  ;;  %v1081_v11 = vmul.f32 %v2069_v5, %v1763_v3 }
 0x20c   : > { %v2073_v7 = vpop.eup %2072  ;;  %v1084_v9 = vmul.f32 %v2071_v6, %v1768_v0 }
 0x20d   : > { %v2075_v10 = vpop.eup %2074  ;;  %v1082_v12 = vmul.f32 %v2073_v7, %v1764_v4 }
 0x20e   : > { %v2077_v13 = vpop.eup %2076  ;;  %v1011_v14 = vadd.f32 1.0, %v2075_v10  ;;  %v1096_v15 = vpack.c.bf16 %v1084_v9, %v1083_v8 }
 0x20f   : > { %v2079_v17 = vpop.eup %2078  ;;  %v1009_v19 = vadd.f32 1.0, %v2077_v13  ;;  %v1095_v20 = vpack.c.bf16 %v1082_v12, %v1081_v11 }
 0x210   : > { %v2081_v22 = vpop.eup %2080  ;;  %2090 = vrcp.f32 %v1011_v14  ;;  %v1012_v23 = vadd.f32 1.0, %v2079_v17 }
 0x211   : > { %2092 = vrcp.f32 %v1009_v19  ;;  %v1010_v24 = vadd.f32 1.0, %v2081_v22  ;;  %1895 = vmatprep.mubr.msk.bf16.mxu0 %vm507_vm0, %v1095_v20 }
 0x212   : > { %v2083_v27 = vpop.eup %2082  ;;  %2094 = vrcp.f32 %v1012_v23  ;;  %1896 = vmatmul.mubr.msk.bf16.gmra.mrb[20].mxu0 %vm507_vm0, %v1096_v15 }
 0x213   : > { %v2085_v30 = vpop.eup %2084  ;;  %2096 = vrcp.f32 %v1010_v24  ;;  %v1087_v33 = vmul.f32 %v2083_v27, %v1775_v25 }
 0x214   : > { %v2087_v31 = vpop.eup %2086  ;;  %v1085_v35 = vmul.f32 %v2085_v30, %v1771_v28 }
 0x215   : > { %v2089_v32 = vpop.eup %2088  ;;  %v1088_v34 = vmul.f32 %v2087_v31, %v1776_v26 }
 0x216   : > { %v1086_v36 = vmul.f32 %v2089_v32, %v1772_v29 }
 0x217   : > { %v1098_v38 = vpack.c.bf16 %v1088_v34, %v1087_v33 }
 0x218   : > { %v1097_v40 = vpack.c.bf16 %v1086_v36, %v1085_v35 }
 0x21a   : > { %v2091_v43 = vpop.eup %2090  ;;  %1899 = vmatprep.mubr.msk.bf16.mxu0 %vm507_vm0, %v1097_v40 }
 0x21b   : > { %v2093_v46 = vpop.eup %2092  ;;  %1900 = vmatmul.mubr.msk.bf16.gmra.mrb[24].mxu0 %vm507_vm0, %v1098_v38  ;;  %v1091_v49 = vmul.f32 %v2091_v43, %v1783_v41 }
 0x21c   : > { %v2095_v47 = vpop.eup %2094  ;;  %v1089_v51 = vmul.f32 %v2093_v46, %v1779_v44 }
 0x21d   : > { %v2097_v48 = vpop.eup %2096  ;;  %v1092_v50 = vmul.f32 %v2095_v47, %v1784_v42 }
 0x21e   : > { %v1090_v52 = vmul.f32 %v2097_v48, %v1780_v45 }
 0x21f   : > { %v1100_v53 = vpack.c.bf16 %v1092_v50, %v1091_v49 }
 0x220   : > { %v1099_v54 = vpack.c.bf16 %v1090_v52, %v1089_v51 }
 0x222   : > { %1903 = vmatprep.mubr.msk.bf16.mxu0 %vm507_vm0, %v1099_v54 }
 0x223   : > { %1904 = vmatmul.mubr.msk.bf16.gmra.mrb[28].mxu0 %vm507_vm0, %v1100_v53 }
 0x2dd   : > { %v1893_v56 = vpop.f32.mrb[16].mxu0 }
 0x2de   : > { %v2440_v57 = vadd.f32 %v1893_v56, %v2437_v55  ;;  %v1182_v58 = vpop.f32.mrb[17].mxu0 }
 0x2df   : > { %v2443_v18 = vadd.f32 %v2437_v55, %v1182_v58  ;;  %v1894_v59 = vpop.f32.mrb[18].mxu0 }
 0x2e0   : > { %v1263_v60 = vmul.f32 0.5, %v2440_v57  ;;  %v2447_v61 = vadd.f32 %v1894_v59, %v2437_v55  ;;  %v1185_v62 = vpop.f32.mrb[19].mxu0 }
 0x2e1   : > { %v1261_v63 = vmul.f32 0.5, %v2443_v18  ;;  %v2451_v0 = vadd.f32 %v2437_v55, %v1185_v62 }
 0x2e2   : > { %v1281_v1 = vmul.f32 1.442695, %v1263_v60  ;;  %v1264_v2 = vmul.f32 0.5, %v2447_v61 }
 0x2e3   : > { %v1277_v3 = vmul.f32 1.442695, %v1261_v63  ;;  %v1262_v4 = vmul.f32 0.5, %v2451_v0 }
 0x2e4   : > { %2098 = vpow2.f32 %v1281_v1  ;;  %v1283_v5 = vmul.f32 1.442695, %v1264_v2 }
 0x2e5   : > { %2100 = vpow2.f32 %v1277_v3  ;;  %v1279_v6 = vmul.f32 1.442695, %v1262_v4  ;;  %v1897_v7 = vpop.f32.mrb[20].mxu0 }
 0x2e6   : > { %v2456_v8 = vadd.f32 %v1897_v7, %v2437_v55  ;;  %v1198_v9 = vpop.f32.mrb[21].mxu0  ;;  %2102 = vpow2.f32 %v1283_v5 }
 0x2e7   : > { %v2459_v10 = vadd.f32 %v2437_v55, %v1198_v9  ;;  %v1898_v11 = vpop.f32.mrb[22].mxu0  ;;  %2104 = vpow2.f32 %v1279_v6 }
 0x2e8   : > { %v1267_v12 = vmul.f32 0.5, %v2456_v8  ;;  %v2463_v13 = vadd.f32 %v1898_v11, %v2437_v55  ;;  %v1201_v14 = vpop.f32.mrb[23].mxu0 }
 0x2e9   : > { %v1265_v15 = vmul.f32 0.5, %v2459_v10  ;;  %v2467_v16 = vadd.f32 %v2437_v55, %v1201_v14  ;;  %v1247_v14 = vld [vmem:[%s2523_s18 + $0x10] sm:$0xff] }
 0x2ea   : > { %v1289_v17 = vmul.f32 1.442695, %v1267_v12  ;;  %v1268_v19 = vmul.f32 0.5, %v2463_v13 }
 0x2eb   : > { %v1266_v20 = vmul.f32 0.5, %v2467_v16  ;;  %v1285_v22 = vmul.f32 1.442695, %v1265_v15 }
 0x2ec   : > { %2106 = vpow2.f32 %v1289_v17  ;;  %v1291_v21 = vmul.f32 1.442695, %v1268_v19  ;;  %v1245_v17 = vld [vmem:[%s2523_s18] sm:$0xff] }
 0x2ed   : > { %v1287_v24 = vmul.f32 1.442695, %v1266_v20 }
 0x2ee   : > { %v2099_v23 = vpop.eup %2098  ;;  %2108 = vpow2.f32 %v1291_v21  ;;  %v1901_v25 = vpop.f32.mrb[24].mxu0  ;;  %v1248_v21 = vld [vmem:[%s2523_s18 + $0x18] sm:$0xff] }
 0x2ef   : > { %v2101_v26 = vpop.eup %2100  ;;  %v2472_v27 = vadd.f32 %v1901_v25, %v2437_v55  ;;  %v1214_v28 = vpop.f32.mrb[25].mxu0  ;;  %1329 = vrot.lane.b32.xlu1 %v2099_v23, %s2194_s28  ;;  %2110 = vpow2.f32 %v1285_v22  ;;  %v1246_v25 = vld [vmem:[%s2523_s18 + $0x8] sm:$0xff] }
 0x2f0   : > { %v2476_v29 = vadd.f32 %v2437_v55, %v1214_v28  ;;  %v1902_v30 = vpop.f32.mrb[26].mxu0  ;;  %1325 = vrot.lane.b32.xlu0 %v2101_v26, %s2194_s28  ;;  %v2103_v34 = vpop.eup %2102  ;;  %2112 = vpow2.f32 %v1287_v24 }
 0x2f1   : > { %v1271_v31 = vmul.f32 0.5, %v2472_v27  ;;  %v2481_v32 = vadd.f32 %v1902_v30, %v2437_v55  ;;  %v1217_v33 = vpop.f32.mrb[27].mxu0  ;;  %v2105_v37 = vpop.eup %2104 }
 0x2f2   : > { %v1269_v35 = vmul.f32 0.5, %v2476_v29  ;;  %v2485_v36 = vadd.f32 %v2437_v55, %v1217_v33 }
 0x2f3   : > { %v1297_v38 = vmul.f32 1.442695, %v1271_v31  ;;  %v1272_v39 = vmul.f32 0.5, %v2481_v32  ;;  %1331 = vrot.lane.b32.xlu1 %v2103_v34, %s2194_s28  ;;  %v1251_v34 = vld [vmem:[%s2523_s18 + $0x30] sm:$0xff] }
 0x2f4   : > { %v1270_v40 = vmul.f32 0.5, %v2485_v36  ;;  %1327 = vrot.lane.b32.xlu0 %v2105_v37, %s2194_s28  ;;  %v1293_v41 = vmul.f32 1.442695, %v1269_v35  ;;  %v1252_v35 = vld [vmem:[%s2523_s18 + $0x38] sm:$0xff] }
 0x2f5   : > { %2114 = vpow2.f32 %v1297_v38  ;;  %v1299_v42 = vmul.f32 1.442695, %v1272_v39 }
 0x2f6   : > { %v2107_v43 = vpop.eup %2106  ;;  %v1905_v44 = vpop.f32.mrb[28].mxu0  ;;  %v1295_v45 = vmul.f32 1.442695, %v1270_v40 }
 0x2f7   : > { %2116 = vpow2.f32 %v1299_v42  ;;  %v2492_v46 = vadd.f32 %v1905_v44, %v2437_v55  ;;  %v1230_v47 = vpop.f32.mrb[29].mxu0  ;;  %v1249_v42 = vld [vmem:[%s2523_s18 + $0x20] sm:$0xff]  ;;  %v1250_v44 = vld [vmem:[%s2523_s18 + $0x28] sm:$0xff] }
 0x2f8   : > { %v2109_v48 = vpop.eup %2108  ;;  %v2495_v49 = vadd.f32 %v2437_v55, %v1230_v47  ;;  %v1906_v50 = vpop.f32.mrb[30].mxu0  ;;  %1337 = vrot.lane.b32.xlu0 %v2107_v43, %s2194_s28  ;;  %2118 = vpow2.f32 %v1293_v41 }
 0x2f9   : > { %v2499_v51 = vadd.f32 %v1906_v50, %v2437_v55  ;;  %v1233_v52 = vpop.f32.mrb[31].mxu0  ;;  %1339 = vrot.lane.b32.xlu1 %v2109_v48, %s2194_s28  ;;  %v1275_v53 = vmul.f32 0.5, %v2492_v46  ;;  %v2111_v58 = vpop.eup %2110  ;;  %2120 = vpow2.f32 %v1295_v45 }
 0x2fa   : > { %v1273_v54 = vmul.f32 0.5, %v2495_v49  ;;  %v2505_v56 = vadd.f32 %v2437_v55, %v1233_v52  ;;  %v2113_v59 = vpop.eup %2112 }
 0x2fb   : > { %v1276_v62 = vmul.f32 0.5, %v2499_v51  ;;  %v1305_v1 = vmul.f32 1.442695, %v1275_v53  ;;  %v1255_v53 = vld [vmem:[%s2523_s18 + $0x50] sm:$0xff] }
 0x2fc   : > { %v1301_v60 = vmul.f32 1.442695, %v1273_v54  ;;  %v1274_v63 = vmul.f32 0.5, %v2505_v56  ;;  %1333 = vrot.lane.b32.xlu0 %v2111_v58, %s2194_s28 }
 0x2fd   : > { %1335 = vrot.lane.b32.xlu1 %v2113_v59, %s2194_s28  ;;  %v1307_v4 = vmul.f32 1.442695, %v1276_v62  ;;  %v1256_v59 = vld [vmem:[%s2523_s18 + $0x58] sm:$0xff] }
 0x2fe   : > { %2122 = vpow2.f32 %v1301_v60  ;;  %v1303_v2 = vmul.f32 1.442695, %v1274_v63 }
 0x2ff   : > { %v2115_v3 = vpop.eup %2114 }
 0x300   : > { %2124 = vpow2.f32 %v1303_v2  ;;  %1345 = vrot.lane.b32.xlu0 %v2115_v3, %s2194_s28 }
 0x301   : > { %v2117_v55 = vpop.eup %2116  ;;  %2126 = vpow2.f32 %v1305_v1  ;;  %v1253_v1 = vld [vmem:[%s2523_s18 + $0x40] sm:$0xff] }
 0x302   : > { %1347 = vrot.lane.b32.xlu1 %v2117_v55, %s2194_s28  ;;  %v2119_v5 = vpop.eup %2118  ;;  %2128 = vpow2.f32 %v1307_v4  ;;  %v1254_v55 = vld [vmem:[%s2523_s18 + $0x48] sm:$0xff] }
 0x303   : > { %v2121_v6 = vpop.eup %2120 }
 0x304   : > { %1341 = vrot.lane.b32.xlu0 %v2119_v5, %s2194_s28 }
 0x306   : > { %1343 = vrot.lane.b32.xlu1 %v2121_v6, %s2194_s28 }
 0x308   : > { %v2123_v7 = vpop.eup %2122 }
 0x309   : > { %1349 = vrot.lane.b32.xlu0 %v2123_v7, %s2194_s28 }
 0x30a   : > { %v2125_v9 = vpop.eup %2124 }
 0x30b   : > { %1351 = vrot.lane.b32.xlu1 %v2125_v9, %s2194_s28  ;;  %v2127_v11 = vpop.eup %2126 }
 0x30c   : > { %v2129_v12 = vpop.eup %2128 }
 0x30d   : > { %1353 = vrot.lane.b32.xlu0 %v2127_v11, %s2194_s28 }
 0x30f   : > { %1355 = vrot.lane.b32.xlu1 %v2129_v12, %s2194_s28  ;;  %v1257_v12 = vld [vmem:[%s2523_s18 + $0x60] sm:$0xff] }
 0x361   : > { %v1330_v15 = vpop.permute.xlu1 %1329 }
 0x362   : > { %v1375_v19 = vmul.f32 %v1330_v15, %v1247_v14  ;;  %v1326_v20 = vpop.permute.xlu0 %1325  ;;  %v1258_v15 = vld [vmem:[%s2523_s18 + $0x68] sm:$0xff] }
 0x363   : > { %v1373_v23 = vmul.f32 %v1326_v20, %v1245_v17 }
 0x364   : > { %v1391_v22 = vadd.f32 %v1375_v19, %v2440_v57 }
 0x365   : > { %v1332_v24 = vpop.permute.xlu1 %1331  ;;  %v1389_v30 = vadd.f32 %v1373_v23, %v2443_v18 }
 0x366   : > { %v1376_v26 = vmul.f32 %v1332_v24, %v1248_v21  ;;  %1425 = vrot.lane.b32.xlu0 %v1391_v22, %s2195_s27  ;;  %v1328_v28 = vpop.permute.xlu0 %1327  ;;  %v1259_v21 = vld [vmem:[%s2523_s18 + $0x70] sm:$0xff] }
 0x367   : > { %v1374_v33 = vmul.f32 %v1328_v28, %v1246_v25  ;;  %v1260_v25 = vld [vmem:[%s2523_s18 + $0x78] sm:$0xff]  ;;  %s2196_s18 = smov [#allocation2]  }
 0x368   : > { %v1392_v31 = vadd.f32 %v1376_v26, %v2447_v61 }
 0x369   : > { %v1390_v40 = vadd.f32 %v1374_v33, %v2451_v0 }
 0x36a   : > { %1427 = vrot.lane.b32.xlu1 %v1392_v31, %s2195_s27  ;;  %1421 = vrot.lane.b32.xlu0 %v1389_v30, %s2195_s27  ;;  %v1338_v37 = vpop.permute.xlu0 %1337 }
 0x36b   : > { %v1379_v38 = vmul.f32 %v1338_v37, %v1251_v34  ;;  %v1340_v39 = vpop.permute.xlu1 %1339 }
 0x36c   : > { %v1380_v41 = vmul.f32 %v1340_v39, %v1252_v35 }
 0x36d   : > { %v1395_v43 = vadd.f32 %v1379_v38, %v2456_v8 }
 0x36e   : > { %1423 = vrot.lane.b32.xlu1 %v1390_v40, %s2195_s27  ;;  %v1334_v45 = vpop.permute.xlu0 %1333  ;;  %v1396_v50 = vadd.f32 %v1380_v41, %v2463_v13 }
 0x36f   : > { %v1377_v47 = vmul.f32 %v1334_v45, %v1249_v42  ;;  %v1336_v48 = vpop.permute.xlu1 %1335  ;;  %1433 = vrot.lane.b32.xlu0 %v1395_v43, %s2195_s27 }
 0x370   : > { %v1378_v52 = vmul.f32 %v1336_v48, %v1250_v44 }
 0x371   : > { %v1393_v54 = vadd.f32 %v1377_v47, %v2459_v10 }
 0x372   : > { %1435 = vrot.lane.b32.xlu1 %v1396_v50, %s2195_s27  ;;  %v1346_v58 = vpop.permute.xlu0 %1345  ;;  %v1394_v62 = vadd.f32 %v1378_v52, %v2467_v16 }
 0x373   : > { %v1383_v60 = vmul.f32 %v1346_v58, %v1255_v53  ;;  %1429 = vrot.lane.b32.xlu0 %v1393_v54, %s2195_s27 }
 0x374   : > { %v1348_v63 = vpop.permute.xlu1 %1347 }
 0x375   : > { %v1399_v2 = vadd.f32 %v1383_v60, %v2472_v27  ;;  %v1384_v3 = vmul.f32 %v1348_v63, %v1256_v59 }
 0x376   : > { %1431 = vrot.lane.b32.xlu1 %v1394_v62, %s2195_s27  ;;  %v1342_v4 = vpop.permute.xlu0 %1341 }
 0x377   : > { %v1381_v5 = vmul.f32 %v1342_v4, %v1253_v1  ;;  %1441 = vrot.lane.b32.xlu0 %v1399_v2, %s2195_s27  ;;  %v1400_v6 = vadd.f32 %v1384_v3, %v2481_v32 }
 0x378   : > { %v1344_v7 = vpop.permute.xlu1 %1343 }
 0x379   : > { %v1397_v9 = vadd.f32 %v1381_v5, %v2476_v29  ;;  %v1382_v11 = vmul.f32 %v1344_v7, %v1254_v55 }
 0x37a   : > { %1443 = vrot.lane.b32.xlu1 %v1400_v6, %s2195_s27 }
 0x37b   : > { %v1350_v14 = vpop.permute.xlu0 %1349  ;;  %1437 = vrot.lane.b32.xlu0 %v1397_v9, %s2195_s27  ;;  %v1398_v17 = vadd.f32 %v1382_v11, %v2485_v36 }
 0x37c   : > { %v1385_v19 = vmul.f32 %v1350_v14, %v1257_v12 }
 0x37d   : > { %v1352_v20 = vpop.permute.xlu1 %1351 }
 0x37e   : > { %v1401_v22 = vadd.f32 %v1385_v19, %v2495_v49  ;;  %v1386_v23 = vmul.f32 %v1352_v20, %v1258_v15  ;;  %1439 = vrot.lane.b32.xlu1 %v1398_v17, %s2195_s27 }
 0x37f   : > { %v1354_v24 = vpop.permute.xlu0 %1353 }
 0x380   : > { %v1402_v26 = vadd.f32 %v1386_v23, %v2505_v56  ;;  %v1387_v28 = vmul.f32 %v1354_v24, %v1259_v21  ;;  %1445 = vrot.lane.b32.xlu0 %v1401_v22, %s2195_s27 }
 0x381   : > { %v1356_v30 = vpop.permute.xlu1 %1355 }
 0x382   : > { %v1403_v31 = vadd.f32 %v1387_v28, %v2492_v46  ;;  %v1388_v33 = vmul.f32 %v1356_v30, %v1260_v25  ;;  %1447 = vrot.lane.b32.xlu1 %v1402_v26, %s2195_s27 }
 0x384   : > { %v1404_v34 = vadd.f32 %v1388_v33, %v2499_v51  ;;  %1449 = vrot.lane.b32.xlu0 %v1403_v31, %s2195_s27 }
 0x386   : > { %1451 = vrot.lane.b32.xlu1 %v1404_v34, %s2195_s27  ;;  %s2134_s27 = sshll.u32 %s2196_s18, 4  ;;  %s2135_s27 = int_to_ptr.vmem [resolvable:$false] %s2134_s27 }
 0x387   : > { %s2136_s21 = scalar_lea.vmem %s2135_s27, 4096  ;;  %p2137_p0 = scmp.lt.s32.totalorder %s2644_s26, %s2135_s27 }
 0x388   : > { %p2138_p1 = scmp.lt.s32.totalorder %s2136_s21, %s2130_s12 }
 0x38a   : > { %p2139_p2 = por %p2138_p1, %p2137_p0 }
 0x38c   : > { %p2140_p3 = pnand %p2139_p2, %p2133_p13 }
 0x3d8   : > { %v1426_v35 = vpop.permute.xlu0 %1425 }
 0x3d9   : > { %v1472_v37 = vsel %vm1469_vm1, %v2440_v57, %v1426_v35 }
 0x3da   : > { %v1489_v38 = vsel %vm1486_vm2, %v1472_v37, 0.0 }
 0x3db   : > { %1505 = vst [vmem:[%s2579_s25 + $0x10] sm:$0xff] %v1489_v38 }
 0x3dc   : > { %v1428_v39 = vpop.permute.xlu1 %1427  ;;  %v1422_v40 = vpop.permute.xlu0 %1421 }
 0x3dd   : > { %v1473_v41 = vsel %vm1469_vm1, %v2447_v61, %v1428_v39  ;;  %v1470_v42 = vsel %vm1469_vm1, %v2443_v18, %v1422_v40 }
 0x3de   : > { %v1490_v57 = vsel %vm1486_vm2, %v1473_v41, 0.0  ;;  %v1487_v43 = vsel %vm1486_vm2, %v1470_v42, 0.0 }
 0x3df   : > { %1506 = vst [vmem:[%s2579_s25 + $0x18] sm:$0xff] %v1490_v57  ;;  %1503 = vst [vmem:[%s2579_s25] sm:$0xff] %v1487_v43 }
 0x3e0   : > { %v1424_v44 = vpop.permute.xlu1 %1423 }
 0x3e1   : > { %v1471_v45 = vsel %vm1469_vm1, %v2451_v0, %v1424_v44  ;;  %v1434_v47 = vpop.permute.xlu0 %1433 }
 0x3e2   : > { %v1488_v48 = vsel %vm1486_vm2, %v1471_v45, 0.0  ;;  %v1476_v61 = vsel %vm1469_vm1, %v2456_v8, %v1434_v47 }
 0x3e3   : > { %1504 = vst [vmem:[%s2579_s25 + $0x8] sm:$0xff] %v1488_v48  ;;  %v1493_v18 = vsel %vm1486_vm2, %v1476_v61, 0.0 }
 0x3e4   : > { %1509 = vst [vmem:[%s2579_s25 + $0x30] sm:$0xff] %v1493_v18  ;;  %v1436_v50 = vpop.permute.xlu1 %1435 }
 0x3e5   : > { %v1477_v52 = vsel %vm1469_vm1, %v2463_v13, %v1436_v50  ;;  %v1430_v53 = vpop.permute.xlu0 %1429 }
 0x3e6   : > { %v1494_v54 = vsel %vm1486_vm2, %v1477_v52, 0.0  ;;  %v1474_v0 = vsel %vm1469_vm1, %v2459_v10, %v1430_v53 }
 0x3e7   : > { %1510 = vst [vmem:[%s2579_s25 + $0x38] sm:$0xff] %v1494_v54  ;;  %v1491_v8 = vsel %vm1486_vm2, %v1474_v0, 0.0 }
 0x3e8   : > { %1507 = vst [vmem:[%s2579_s25 + $0x20] sm:$0xff] %v1491_v8  ;;  %v1432_v58 = vpop.permute.xlu1 %1431 }
 0x3e9   : > { %v1475_v59 = vsel %vm1469_vm1, %v2467_v16, %v1432_v58  ;;  %v1442_v60 = vpop.permute.xlu0 %1441 }
 0x3ea   : > { %v1492_v62 = vsel %vm1486_vm2, %v1475_v59, 0.0  ;;  %v1480_v13 = vsel %vm1469_vm1, %v2472_v27, %v1442_v60 }
 0x3eb   : > { %1508 = vst [vmem:[%s2579_s25 + $0x28] sm:$0xff] %v1492_v62  ;;  %v1497_v10 = vsel %vm1486_vm2, %v1480_v13, 0.0 }
 0x3ec   : > { %1513 = vst [vmem:[%s2579_s25 + $0x50] sm:$0xff] %v1497_v10  ;;  %v1444_v63 = vpop.permute.xlu1 %1443 }
 0x3ed   : > { %v1481_v1 = vsel %vm1469_vm1, %v2481_v32, %v1444_v63  ;;  %v1438_v2 = vpop.permute.xlu0 %1437 }
 0x3ee   : > { %v1498_v16 = vsel %vm1486_vm2, %v1481_v1, 0.0  ;;  %v1478_v3 = vsel %vm1469_vm1, %v2476_v29, %v1438_v2 }
 0x3ef   : > { %1514 = vst [vmem:[%s2579_s25 + $0x58] sm:$0xff] %v1498_v16  ;;  %v1495_v27 = vsel %vm1486_vm2, %v1478_v3, 0.0 }
 0x3f0   : > { %1511 = vst [vmem:[%s2579_s25 + $0x40] sm:$0xff] %v1495_v27  ;;  %v1440_v4 = vpop.permute.xlu1 %1439 }
 0x3f1   : > { %v1479_v55 = vsel %vm1469_vm1, %v2485_v36, %v1440_v4 }
 0x3f2   : > { %v1496_v5 = vsel %vm1486_vm2, %v1479_v55, 0.0  ;;  %v1446_v32 = vpop.permute.xlu0 %1445 }
 0x3f3   : > { %1512 = vst [vmem:[%s2579_s25 + $0x48] sm:$0xff] %v1496_v5  ;;  %v1482_v6 = vsel %vm1469_vm1, %v2495_v49, %v1446_v32 }
 0x3f4   : > { %v1499_v7 = vsel %vm1486_vm2, %v1482_v6, 0.0  ;;  %v1448_v29 = vpop.permute.xlu1 %1447 }
 0x3f5   : > { %1515 = vst [vmem:[%s2579_s25 + $0x60] sm:$0xff] %v1499_v7  ;;  %v1483_v9 = vsel %vm1469_vm1, %v2505_v56, %v1448_v29 }
 0x3f6   : > { %v1500_v36 = vsel %vm1486_vm2, %v1483_v9, 0.0  ;;  %v1450_v11 = vpop.permute.xlu0 %1449 }
 0x3f7   : > { %1516 = vst [vmem:[%s2579_s25 + $0x68] sm:$0xff] %v1500_v36  ;;  %v1484_v12 = vsel %vm1469_vm1, %v2492_v46, %v1450_v11 }
 0x3f8   : > { %v1501_v49 = vsel %vm1486_vm2, %v1484_v12, 0.0  ;;  %v1452_v14 = vpop.permute.xlu1 %1451 }
 0x3f9   : > { %1517 = vst [vmem:[%s2579_s25 + $0x70] sm:$0xff] %v1501_v49  ;;  %v1485_v56 = vsel %vm1469_vm1, %v2499_v51, %v1452_v14 }
 0x3fa   : > { %v1502_v15 = vsel %vm1486_vm2, %v1485_v56, 0.0 }
 0x3fb   : > { %1518 = vst [vmem:[%s2579_s25 + $0x78] sm:$0xff] %v1502_v15 }
 0x3fc   : > { %2143 = shalt.err (!%p2140_p3)
}
 0x3fd   : > { %s2144_s20 = scalar_lea.hbm %s2642_s11, 2048  ;;  %s2148_s28 = scalar_lea.hbm %s2704_s10, 4096 }
 0x3fe   : > { %p2145_p4 = scmp.ne.s32.totalorder %s2642_s11, %s2144_s20  ;;  %p2149_p9 = scmp.lt.u32.totalorder %s2642_s11, %s2704_s10 }
 0x3ff   : > { %p2150_p10 = scmp.lt.u32.totalorder %s2148_s28, %s2144_s20  ;;  %p2152_p12 = scmp.lt.u32.totalorder %s2144_s20, %s2642_s11 }
 0x400   : > { %p2146_p7 = pnand %p2145_p4, %p2292_p5 }
 0x401   : > { %p2151_p11 = por %p2150_p10, %p2149_p9 }
 0x402   : > { %p2147_p8 = pneg %p2146_p7 }
 0x403   : > { %p2153_p13 = por %p2152_p12, %p2151_p11 }
 0x405   : > { %p2154_p0 = pnand %p2153_p13, %p2147_p8 }
 0x407   : > { %2157 = shalt.err (!%p2154_p0)
}
 0x408   : > { %s2197_s12 = smov 128   ;;  %s2198_s27 = smov 8  }
 0x409   : > { %1907 = dma.vmem_to_hbm [thread:$0]  (%p2292_p5), %s2644_s26, 2048, %s2642_s11, %s2653_s17, %s2197_s12, %s2197_s12, %s2198_s27  }
 0x40a PF: > { %p1913_p1 = scmp.ge.s32.totalorder %s2192_s16, 2  ;;  %s1548_s21 = sand.u32 1, %s2180_s13  }
 0x40b   : > { %s1549_s20 = scalar_lea.sflag [#allocation3], %s1548_s21 }
 0x40c   : > { %p1910_p2 = pnand %p1913_p1, %p2296_p6 }
 0x40e   : > { %2175 = dma.done.wait (!%p1910_p2), %s1549_s20, 2048  }
 0x40f   : > { %2177 = vsyncadd (!%p1910_p2), %s1549_s20, 4294965248  ;;  %p20_p3 = scmp.ge.s32.totalorder %s2279_s19, 4   ;;  %s2707_s13 = smov %s2184_s14 }
 0x410   : > { %s2708_s14 = smov %s2188_s15  ;;  %s2709_s15 = smov %s2290_s22 }
 0x411   : > { %s2710_s16 = smov %s2279_s19  ;;  %22 = sbr.rel (!%p20_p3) target bundleno = 3 (0x3), region = 104 }
 0x418   :  { %1554 = vsyncpa [#allocation3], 1 }
 0x419   :  { %1556 = vsyncpa [#allocation3 + $0x1], 1 }

</bundles_post_ra>
